<compile_context>
chip_gen: v5e
topology: v5e:2x2
jax: 0.10.0
libtpu: 0.0.40
codegen_flags: <defaults>
</compile_context>

<pallas_src>
import math
from functools import partial

import jax
import jax.numpy as jnp
from jax import lax
from jax.experimental import pallas as pl
from jax.experimental.pallas import tpu as pltpu


# ------------------------------ layout helpers -------------------------------

def _round_up(x, m):
    return ((x + m - 1) // m) * m


def _layout(elem_size, emb_size):
    """Lane layout of the fused projection output.

    Q occupies lanes [0, M), K occupies lanes [KOFF, KOFF+M) of the "QK"
    region (width PQK); V occupies lanes [PQK, PQK+E) of its own region
    (width PV).  When 2*M <= 128, Q and K share a single 128-lane tile.
    """
    M, E = emb_size, elem_size
    if 2 * M <= 128:
        pqk, koff = 128, M            # packed: Q and K in one lane tile
    else:
        pq = _round_up(M, 128)
        pqk, koff = 2 * pq, pq        # one lane-tile-aligned region each
    pv = _round_up(E, 128)
    return M, E, pqk, koff, pv, pqk + pv


_VMEM_BLOCK_BUDGET = 8 << 20          # conservative for v5e/v6e/v7x scoped VMEM


def _select_block(B, N, E, pqk, pv, wl):
    """Pick batches-per-grid-step `bb` from a VMEM byte budget.

    Prefers >= 4 grid steps (2 per v7x TensorCore, and >=2 for pipelining on
    1-TC chips) while keeping the per-step footprint under the budget and
    (bb*N) % 8 == 0 for f32 sublane tiling.
    """
    def footprint(bb):
        per_b = (N * E * 4) * 2           # activation block (double buffered)
        per_b += (N * pv * 4) * 2         # output block (double buffered)
        per_b += N * wl * 4               # fused projection output h
        per_b += N * (2 * pqk + pv) * 4   # q/k/v VMEM scratch
        per_b += 3 * N * N * 4            # scores / exp / probs (one batch live)
        fixed = (E * wl + 3 * wl) * 4 * 2 + (1 << 20)   # W, P + slack
        return fixed + bb * per_b

    if N % 8 != 0 or B == 1:
        # Single full-extent block: no divisibility constraints, no reshape risk.
        return B, 1, footprint(B)

    feasible = [bb for bb in range(1, B + 1)
                if B % bb == 0 and (footprint(bb) <= _VMEM_BLOCK_BUDGET or bb == 1)]
    want_steps = 4 if B >= 4 else 2
    preferred = [bb for bb in feasible if B // bb >= want_steps]
    bb = max(preferred) if preferred else max(feasible)
    return bb, B // bb, footprint(bb)


# --------------------------------- kernel ------------------------------------

def attention_head_kernel(x_ref, w_ref, p_ref, out_ref, q_s, k_s, v_s, *,
                          bb, n, m, e, pqk, koff, pv, use_bf16, n_mult8):
    """One grid step = `bb` batch elements of the attention head.

    x_ref  : (bb*n, E)      flattened activations for this batch block
    w_ref  : (E, pqk+pv)    fused [Wq | Wk | Wv] (zero on padding lanes)
    p_ref  : (3, pqk+pv)    row0 bias, row1 LN gamma, row2 LN beta
                            (Q's gamma/beta pre-scaled by 1/int(sqrt(emb)))
    out_ref: (bb, n, pv)    lane-dense output (real data in lanes [0, e))
    q_s/k_s/v_s: VMEM scratch with post-LN Q, K (lane-0 aligned) and V.
    """
    x = x_ref[...]
    w = w_ref[...]
    if use_bf16:
        # Only once the block is big enough to be MXU-bound: bf16 inputs,
        # f32 accumulation.
        x = x.astype(jnp.bfloat16)
        w = w.astype(jnp.bfloat16)

    # Fused Q/K/V projection + bias in one MXU pass.
    h = jnp.dot(x, w, preferred_element_type=jnp.float32) + p_ref[0:1, :]

    # ---- LayerNorm on the packed Q|K region (masked, two-pass variance) ----
    qk_seg = h[:, 0:pqk]
    lane = lax.broadcasted_iota(jnp.int32, (1, pqk), 1)
    mask_q = lane < m
    mask_k = jnp.logical_and(lane >= koff, lane < koff + m)

    def _ln_stats(seg, mask, d):
        inv_d = 1.0 / float(d)
        mu = jnp.sum(jnp.where(mask, seg, 0.0), axis=-1, keepdims=True) * inv_d
        diff = seg - mu
        var = jnp.sum(jnp.where(mask, diff * diff, 0.0), axis=-1,
                      keepdims=True) * inv_d
        return diff, lax.rsqrt(var + 1e-5)

    dq, rsq = _ln_stats(qk_seg, mask_q, m)
    dk, rsk = _ln_stats(qk_seg, mask_k, m)
    normed = jnp.where(mask_q, dq * rsq, dk * rsk)
    # gamma/beta are zero outside the Q/K masks, so non-Q/K lanes become zero.
    qk = normed * p_ref[1:2, 0:pqk] + p_ref[2:3, 0:pqk]
    q_s[...] = jnp.where(mask_q, qk, 0.0)
    # Rotate K's lanes down to lane 0 so Q and K overlap for the contraction.
    # (XLU rotate -> does not load the VALU/MXU slots.  For the packed demo
    # layout the rotation is by exactly half a tile.)
    k_s[...] = pltpu.roll(jnp.where(mask_k, qk, 0.0), pqk - koff, axis=1)

    # ---- LayerNorm on V (zero-padded lanes, masked two-pass variance) ----
    v_seg = h[:, pqk:pqk + pv]
    vlane = lax.broadcasted_iota(jnp.int32, (1, pv), 1)
    mask_v = vlane < e
    dv, rsv = _ln_stats(v_seg, mask_v, e)
    v_s[...] = dv * rsv * p_ref[1:2, pqk:pqk + pv] + p_ref[2:3, pqk:pqk + pv]

    # ---- per-batch attention: QK^T -> softmax -> PV ----
    qk_dims = (((1,), (1,)), ((), ()))     # contract last dims (no K transpose)

    def _attend(b, off):
        q_b = q_s[pl.ds(off, n), :]
        k_b = k_s[pl.ds(off, n), :]
        v_b = v_s[pl.ds(off, n), :]
        if use_bf16:
            q_b = q_b.astype(jnp.bfloat16)
            k_b = k_b.astype(jnp.bfloat16)
        s = lax.dot_general(q_b, k_b, qk_dims,
                            preferred_element_type=jnp.float32)   # (n, n)
        s_max = jnp.max(s, axis=-1, keepdims=True)
        p_exp = jnp.exp(s - s_max)
        denom = jnp.sum(p_exp, axis=-1, keepdims=True)
        p_norm = p_exp * pl.reciprocal(denom, approx=True)
        if use_bf16:
            p_norm = p_norm.astype(jnp.bfloat16)
            v_b = v_b.astype(jnp.bfloat16)
        out_b = jnp.dot(p_norm, v_b, preferred_element_type=jnp.float32)
        out_ref[b] = out_b.astype(out_ref.dtype)

    if bb <= 8:
        # Small batch block: fully unrolled, static offsets.
        for b in range(bb):
            _attend(b, b * n)
    else:
        # Large batch block: loop to bound live ranges (one score matrix live).
        @pl.loop(0, bb)
        def _per_batch(b):
            off = b * n
            if n_mult8:
                off = pl.multiple_of(off, 8)
            _attend(b, off)


# -------------------------------- wrappers ------------------------------------

def prepare_params(params, elem_size, emb_size):
    """One-time packing of weights/LN params into the fused kernel operands.

    Run once, OUTSIDE the per-call forward path (perf review: the packing
    chain was costing as much as the kernel at small shapes).
    """
    M, E, pqk, koff, pv, wl = _layout(elem_size, emb_size)
    inv_scale = 1.0 / float(int(math.sqrt(emb_size)))   # matches PyTorch int(sqrt)

    W = jnp.zeros((E, wl), jnp.float32)
    W = W.at[:, 0:M].set(params["wq"].T)
    W = W.at[:, koff:koff + M].set(params["wk"].T)
    W = W.at[:, pqk:pqk + E].set(params["wv"].T)

    P = jnp.zeros((3, wl), jnp.float32)
    P = P.at[0, 0:M].set(params["bq"])
    P = P.at[0, koff:koff + M].set(params["bk"])
    P = P.at[0, pqk:pqk + E].set(params["bv"])
    # 1/int(sqrt(emb)) folded into Q's LayerNorm affine (exact rewrite).
    P = P.at[1, 0:M].set(params["qln_g"] * inv_scale)
    P = P.at[1, koff:koff + M].set(params["kln_g"])
    P = P.at[1, pqk:pqk + E].set(params["vln_g"])
    P = P.at[2, 0:M].set(params["qln_b"] * inv_scale)
    P = P.at[2, koff:koff + M].set(params["kln_b"])
    P = P.at[2, pqk:pqk + E].set(params["vln_b"])
    return {"W": jax.device_put(W), "P": jax.device_put(P)}


@partial(jax.jit, static_argnames=("emb_size",))
def attention_head_forward(x, w_fused, p_fused, *, emb_size):
    """Fused AttentionHead forward.

    Returns the lane-dense padded output of shape (B, N, round_up_128(E));
    the real result lives in lanes [0, E).  Consumers should keep / fuse this
    padded layout; crop once downstream via crop_output() if the exact
    (B, N, E) tensor is needed (avoids a per-call lane-sparse HBM pass).
    """
    B, N, E = x.shape
    M, _, pqk, koff, pv, wl = _layout(E, emb_size)
    assert w_fused.shape == (E, wl) and p_fused.shape == (3, wl)

    bb, steps, fp_bytes = _select_block(B, N, E, pqk, pv, wl)
    rows = bb * N
    use_bf16 = rows >= 256             # demo shape stays f32 (overhead-bound)
    n_mult8 = (N % 8 == 0)

    vmem_limit = int(min(64 << 20, max(32 << 20, 2 * fp_bytes)))
    cost = pl.CostEstimate(
        flops=2 * B * N * E * wl + 2 * B * N * N * (pqk + pv),
        transcendentals=B * N * N + 6 * B * N,
        bytes_accessed=4 * (B * N * E + E * wl + 3 * wl + B * N * pv))

    grid_spec = pltpu.PrefetchScalarGridSpec(
        num_scalar_prefetch=0,
        grid=(steps,),
        in_specs=[
            pl.BlockSpec((rows, E), lambda i: (i, 0)),     # activation block
            pl.BlockSpec((E, wl), lambda i: (0, 0)),       # fused weights (resident)
            pl.BlockSpec((3, wl), lambda i: (0, 0)),       # bias / gamma / beta
        ],
        out_specs=pl.BlockSpec((bb, N, pv), lambda i: (i, 0, 0)),
        scratch_shapes=[
            pltpu.VMEM((rows, pqk), jnp.float32),          # Q (post-LN, /sqrt(emb))
            pltpu.VMEM((rows, pqk), jnp.float32),          # K (post-LN, lane-aligned)
            pltpu.VMEM((rows, pv), jnp.float32),           # V (post-LN)
        ],
    )

    kernel = partial(attention_head_kernel, bb=bb, n=N, m=M, e=E, pqk=pqk,
                     koff=koff, pv=pv, use_bf16=use_bf16, n_mult8=n_mult8)

    return pl.pallas_call(
        kernel,
        out_shape=jax.ShapeDtypeStruct((B, N, pv), jnp.float32),
        grid_spec=grid_spec,
        compiler_params=pltpu.CompilerParams(
            dimension_semantics=("parallel",),
            vmem_limit_bytes=vmem_limit),
        cost_estimate=cost,
    )(x.reshape(B * N, E), w_fused, p_fused)


def crop_output(out_padded, elem_size):
    """One-time crop to the module's exact (B, N, elem_size) output."""
    return out_padded[:, :, :elem_size]


# ----------------------- params / pure-JAX reference --------------------------

def init_params(key, elem_size, emb_size):
    ks = jax.random.split(key, 6)
    # Deterministic synthetic init (shapes follow nn.Linear: (out, in)).
    return {
        "wq": 0.1 * jax.random.normal(ks[0], (emb_size, elem_size), jnp.float32),
        "bq": 0.1 * jax.random.normal(ks[1], (emb_size,), jnp.float32),
        "wk": 0.1 * jax.random.normal(ks[2], (emb_size, elem_size), jnp.float32),
        "bk": 0.1 * jax.random.normal(ks[3], (emb_size,), jnp.float32),
        "wv": 0.1 * jax.random.normal(ks[4], (elem_size, elem_size), jnp.float32),
        "bv": 0.1 * jax.random.normal(ks[5], (elem_size,), jnp.float32),
        "qln_g": jnp.ones((emb_size,), jnp.float32),
        "qln_b": jnp.zeros((emb_size,), jnp.float32),
        "kln_g": jnp.ones((emb_size,), jnp.float32),
        "kln_b": jnp.zeros((emb_size,), jnp.float32),
        "vln_g": jnp.ones((elem_size,), jnp.float32),
        "vln_b": jnp.zeros((elem_size,), jnp.float32),
    }


def reference_forward(x, params, emb_size):
    """Pure-JAX reference mirroring the PyTorch forward exactly."""
    def ln(h, g, b):
        mu = jnp.mean(h, axis=-1, keepdims=True)
        var = jnp.mean((h - mu) ** 2, axis=-1, keepdims=True)
        return (h - mu) / jnp.sqrt(var + 1e-5) * g + b

    q = ln(x @ params["wq"].T + params["bq"], params["qln_g"], params["qln_b"])
    k = ln(x @ params["wk"].T + params["bk"], params["kln_g"], params["kln_b"])
    v = ln(x @ params["wv"].T + params["bv"], params["vln_g"], params["vln_b"])
    s = jnp.einsum("bqd,bkd->bqk", q, k) / int(math.sqrt(emb_size))
    p = jax.nn.softmax(s, axis=-1)
    return jnp.einsum("bqk,bkd->bqd", p, v)


# TODO(synk): only forward() is implemented; attention_weights() (returning the
# softmax matrix) would be the same kernel with the per-batch scores written
# out instead of the PV product.

if __name__ == "__main__":
    batch, n_elems, elem_size, emb_size = 2, 8, 32, 64

    key = jax.random.PRNGKey(0)
    kx, kp = jax.random.split(key)
    x = jax.random.normal(kx, (batch, n_elems, elem_size), jnp.float32)
    params = init_params(kp, elem_size, emb_size)

    # One-time packing of the fused operands (hoisted out of the forward path).
    fused = prepare_params(params, elem_size, emb_size)

    out_padded = attention_head_forward(x, fused["W"], fused["P"],
                                        emb_size=emb_size)
    out_padded = jax.block_until_ready(out_padded)

    # Single downstream crop for the correctness check (consumers that can
    # accept the lane-dense padded layout should skip this).
    out = crop_output(out_padded, elem_size)

    ref = reference_forward(x, params, emb_size)
    assert out.shape == (batch, n_elems, elem_size)
    # Tolerance accounts for pl.reciprocal(approx=True) in the softmax.
    assert jnp.allclose(out, ref, atol=1e-2, rtol=1e-2), "mismatch vs reference"

    print("KERNEL_OK")
</pallas_src>

<mosaic_0001>
module attributes {stable_mosaic.version = 11 : i64} {
  func.func @attention_head_kernel(%arg0: i32, %arg1: memref<8x32xf32, #tpu.memory_space<vmem>>, %arg2: memref<32x256xf32, #tpu.memory_space<vmem>>, %arg3: memref<3x256xf32, #tpu.memory_space<vmem>>, %arg4: memref<1x8x128xf32, #tpu.memory_space<vmem>>, %arg5: memref<8x128xf32, #tpu.memory_space<vmem>>, %arg6: memref<8x128xf32, #tpu.memory_space<vmem>>, %arg7: memref<8x128xf32, #tpu.memory_space<vmem>>) attributes {dimension_semantics = [#tpu.dimension_semantics<parallel>], iteration_bounds = array<i64: 2>, scalar_prefetch = 0 : i64, scratch_operands = 3 : i64, tpu.core_type = #tpu.core_type<tc>, window_params = [{transform_indices = @transform_0, window_bounds = array<i64: 8, 32>}, {pipeline_mode = #tpu.pipeline_mode<synchronous>, transform_indices = @transform_1, window_bounds = array<i64: 32, 256>}, {pipeline_mode = #tpu.pipeline_mode<synchronous>, transform_indices = @transform_2, window_bounds = array<i64: 3, 256>}, {transform_indices = @transform_3, window_bounds = array<i64: 1, 8, 128>}]} {
    %c0 = arith.constant 0 : index
    %c0_0 = arith.constant 0 : index
    %0 = vector.load %arg1[%c0, %c0_0] : memref<8x32xf32, #tpu.memory_space<vmem>>, vector<8x32xf32>
    %c0_1 = arith.constant 0 : index
    %c0_2 = arith.constant 0 : index
    %1 = vector.load %arg2[%c0_1, %c0_2] : memref<32x256xf32, #tpu.memory_space<vmem>>, vector<32x256xf32>
    %cst = arith.constant dense<0.000000e+00> : vector<8x256xf32>
    %2 = tpu.matmul %0, %1, %cst {dimension_numbers = #tpu.dot_dimension_numbers<[1], [0], [0], [1], [0, 0, 1, 1], [], []>} : vector<8x32xf32>, vector<32x256xf32>, vector<8x256xf32> -> vector<8x256xf32>
    %c0_3 = arith.constant 0 : index
    %c0_4 = arith.constant 0 : index
    %3 = vector.load %arg3[%c0_3, %c0_4] : memref<3x256xf32, #tpu.memory_space<vmem>>, vector<1x256xf32>
    %4 = vector.broadcast %3 : vector<1x256xf32> to vector<8x256xf32>
    %5 = arith.addf %2, %4 : vector<8x256xf32>
    %6 = vector.extract_strided_slice %5 {offsets = [0, 0], sizes = [8, 128], strides = [1, 1]} : vector<8x256xf32> to vector<8x128xf32>
    %7 = tpu.iota {dimensions = array<i32: 1>} : vector<1x128xi32>
    %c64_i32 = arith.constant 64 : i32
    %8 = vector.broadcast %c64_i32 : i32 to vector<1x128xi32>
    %9 = arith.cmpi slt, %7, %8 : vector<1x128xi32>
    %c64_i32_5 = arith.constant 64 : i32
    %10 = vector.broadcast %c64_i32_5 : i32 to vector<1x128xi32>
    %11 = arith.cmpi sge, %7, %10 : vector<1x128xi32>
    %c128_i32 = arith.constant 128 : i32
    %12 = vector.broadcast %c128_i32 : i32 to vector<1x128xi32>
    %13 = arith.cmpi slt, %7, %12 : vector<1x128xi32>
    %14 = arith.andi %11, %13 : vector<1x128xi1>
    %cst_6 = arith.constant 0.000000e+00 : f32
    %15 = vector.shape_cast %9 : vector<1x128xi1> to vector<1x128xi1>
    %16 = vector.broadcast %15 : vector<1x128xi1> to vector<8x128xi1>
    %17 = vector.broadcast %cst_6 : f32 to vector<8x128xf32>
    %18 = arith.select %16, %6, %17 : vector<8x128xi1>, vector<8x128xf32>
    %cst_7 = arith.constant dense<0.000000e+00> : vector<8xf32>
    %19 = vector.multi_reduction <add>, %18, %cst_7 [1] : vector<8x128xf32> to vector<8xf32>
    %20 = vector.shape_cast %19 : vector<8xf32> to vector<8x1xf32>
    %cst_8 = arith.constant 1.562500e-02 : f32
    %21 = vector.broadcast %cst_8 : f32 to vector<8x1xf32>
    %22 = arith.mulf %20, %21 : vector<8x1xf32>
    %23 = vector.broadcast %22 : vector<8x1xf32> to vector<8x128xf32>
    %24 = arith.subf %6, %23 : vector<8x128xf32>
    %25 = arith.mulf %24, %24 : vector<8x128xf32>
    %cst_9 = arith.constant 0.000000e+00 : f32
    %26 = vector.shape_cast %9 : vector<1x128xi1> to vector<1x128xi1>
    %27 = vector.broadcast %26 : vector<1x128xi1> to vector<8x128xi1>
    %28 = vector.broadcast %cst_9 : f32 to vector<8x128xf32>
    %29 = arith.select %27, %25, %28 : vector<8x128xi1>, vector<8x128xf32>
    %cst_10 = arith.constant dense<0.000000e+00> : vector<8xf32>
    %30 = vector.multi_reduction <add>, %29, %cst_10 [1] : vector<8x128xf32> to vector<8xf32>
    %31 = vector.shape_cast %30 : vector<8xf32> to vector<8x1xf32>
    %cst_11 = arith.constant 1.562500e-02 : f32
    %32 = vector.broadcast %cst_11 : f32 to vector<8x1xf32>
    %33 = arith.mulf %31, %32 : vector<8x1xf32>
    %cst_12 = arith.constant 9.99999974E-6 : f32
    %34 = vector.broadcast %cst_12 : f32 to vector<8x1xf32>
    %35 = arith.addf %33, %34 : vector<8x1xf32>
    %36 = math.rsqrt %35 : vector<8x1xf32>
    %cst_13 = arith.constant 0.000000e+00 : f32
    %37 = vector.shape_cast %14 : vector<1x128xi1> to vector<1x128xi1>
    %38 = vector.broadcast %37 : vector<1x128xi1> to vector<8x128xi1>
    %39 = vector.broadcast %cst_13 : f32 to vector<8x128xf32>
    %40 = arith.select %38, %6, %39 : vector<8x128xi1>, vector<8x128xf32>
    %cst_14 = arith.constant dense<0.000000e+00> : vector<8xf32>
    %41 = vector.multi_reduction <add>, %40, %cst_14 [1] : vector<8x128xf32> to vector<8xf32>
    %42 = vector.shape_cast %41 : vector<8xf32> to vector<8x1xf32>
    %cst_15 = arith.constant 1.562500e-02 : f32
    %43 = vector.broadcast %cst_15 : f32 to vector<8x1xf32>
    %44 = arith.mulf %42, %43 : vector<8x1xf32>
    %45 = vector.broadcast %44 : vector<8x1xf32> to vector<8x128xf32>
    %46 = arith.subf %6, %45 : vector<8x128xf32>
    %47 = arith.mulf %46, %46 : vector<8x128xf32>
    %cst_16 = arith.constant 0.000000e+00 : f32
    %48 = vector.shape_cast %14 : vector<1x128xi1> to vector<1x128xi1>
    %49 = vector.broadcast %48 : vector<1x128xi1> to vector<8x128xi1>
    %50 = vector.broadcast %cst_16 : f32 to vector<8x128xf32>
    %51 = arith.select %49, %47, %50 : vector<8x128xi1>, vector<8x128xf32>
    %cst_17 = arith.constant dense<0.000000e+00> : vector<8xf32>
    %52 = vector.multi_reduction <add>, %51, %cst_17 [1] : vector<8x128xf32> to vector<8xf32>
    %53 = vector.shape_cast %52 : vector<8xf32> to vector<8x1xf32>
    %cst_18 = arith.constant 1.562500e-02 : f32
    %54 = vector.broadcast %cst_18 : f32 to vector<8x1xf32>
    %55 = arith.mulf %53, %54 : vector<8x1xf32>
    %cst_19 = arith.constant 9.99999974E-6 : f32
    %56 = vector.broadcast %cst_19 : f32 to vector<8x1xf32>
    %57 = arith.addf %55, %56 : vector<8x1xf32>
    %58 = math.rsqrt %57 : vector<8x1xf32>
    %59 = vector.broadcast %36 : vector<8x1xf32> to vector<8x128xf32>
    %60 = arith.mulf %24, %59 : vector<8x128xf32>
    %61 = vector.broadcast %58 : vector<8x1xf32> to vector<8x128xf32>
    %62 = arith.mulf %46, %61 : vector<8x128xf32>
    %63 = vector.shape_cast %9 : vector<1x128xi1> to vector<1x128xi1>
    %64 = vector.broadcast %63 : vector<1x128xi1> to vector<8x128xi1>
    %65 = arith.select %64, %60, %62 : vector<8x128xi1>, vector<8x128xf32>
    %c1 = arith.constant 1 : index
    %c0_20 = arith.constant 0 : index
    %66 = vector.load %arg3[%c1, %c0_20] : memref<3x256xf32, #tpu.memory_space<vmem>>, vector<1x128xf32>
    %67 = vector.broadcast %66 : vector<1x128xf32> to vector<8x128xf32>
    %68 = arith.mulf %65, %67 : vector<8x128xf32>
    %c2 = arith.constant 2 : index
    %c0_21 = arith.constant 0 : index
    %69 = vector.load %arg3[%c2, %c0_21] : memref<3x256xf32, #tpu.memory_space<vmem>>, vector<1x128xf32>
    %70 = vector.broadcast %69 : vector<1x128xf32> to vector<8x128xf32>
    %71 = arith.addf %68, %70 : vector<8x128xf32>
    %cst_22 = arith.constant 0.000000e+00 : f32
    %72 = vector.shape_cast %9 : vector<1x128xi1> to vector<1x128xi1>
    %73 = vector.broadcast %72 : vector<1x128xi1> to vector<8x128xi1>
    %74 = vector.broadcast %cst_22 : f32 to vector<8x128xf32>
    %75 = arith.select %73, %71, %74 : vector<8x128xi1>, vector<8x128xf32>
    %c0_23 = arith.constant 0 : index
    %c0_24 = arith.constant 0 : index
    %76 = vector.load %arg5[%c0_23, %c0_24] : memref<8x128xf32, #tpu.memory_space<vmem>>, vector<8x128xf32>
    tpu.vector_store %arg5[%c0_23, %c0_24], %75 {strides = array<i32>} : memref<8x128xf32, #tpu.memory_space<vmem>>, vector<8x128xf32>,
    %cst_25 = arith.constant 0.000000e+00 : f32
    %77 = vector.shape_cast %14 : vector<1x128xi1> to vector<1x128xi1>
    %78 = vector.broadcast %77 : vector<1x128xi1> to vector<8x128xi1>
    %79 = vector.broadcast %cst_25 : f32 to vector<8x128xf32>
    %80 = arith.select %78, %71, %79 : vector<8x128xi1>, vector<8x128xf32>
    %c64_i32_26 = arith.constant 64 : i32
    %81 = tpu.dynamic_rotate %80 by %c64_i32_26 dim 1 : vector<8x128xf32>, i32 -> vector<8x128xf32>
    %c0_27 = arith.constant 0 : index
    %c0_28 = arith.constant 0 : index
    %82 = vector.load %arg6[%c0_27, %c0_28] : memref<8x128xf32, #tpu.memory_space<vmem>>, vector<8x128xf32>
    tpu.vector_store %arg6[%c0_27, %c0_28], %81 {strides = array<i32>} : memref<8x128xf32, #tpu.memory_space<vmem>>, vector<8x128xf32>,
    %83 = vector.extract_strided_slice %5 {offsets = [0, 128], sizes = [8, 128], strides = [1, 1]} : vector<8x256xf32> to vector<8x128xf32>
    %84 = tpu.iota {dimensions = array<i32: 1>} : vector<1x128xi32>
    %c32_i32 = arith.constant 32 : i32
    %85 = vector.broadcast %c32_i32 : i32 to vector<1x128xi32>
    %86 = arith.cmpi slt, %84, %85 : vector<1x128xi32>
    %cst_29 = arith.constant 0.000000e+00 : f32
    %87 = vector.shape_cast %86 : vector<1x128xi1> to vector<1x128xi1>
    %88 = vector.broadcast %87 : vector<1x128xi1> to vector<8x128xi1>
    %89 = vector.broadcast %cst_29 : f32 to vector<8x128xf32>
    %90 = arith.select %88, %83, %89 : vector<8x128xi1>, vector<8x128xf32>
    %cst_30 = arith.constant dense<0.000000e+00> : vector<8xf32>
    %91 = vector.multi_reduction <add>, %90, %cst_30 [1] : vector<8x128xf32> to vector<8xf32>
    %92 = vector.shape_cast %91 : vector<8xf32> to vector<8x1xf32>
    %cst_31 = arith.constant 3.125000e-02 : f32
    %93 = vector.broadcast %cst_31 : f32 to vector<8x1xf32>
    %94 = arith.mulf %92, %93 : vector<8x1xf32>
    %95 = vector.broadcast %94 : vector<8x1xf32> to vector<8x128xf32>
    %96 = arith.subf %83, %95 : vector<8x128xf32>
    %97 = arith.mulf %96, %96 : vector<8x128xf32>
    %cst_32 = arith.constant 0.000000e+00 : f32
    %98 = vector.shape_cast %86 : vector<1x128xi1> to vector<1x128xi1>
    %99 = vector.broadcast %98 : vector<1x128xi1> to vector<8x128xi1>
    %100 = vector.broadcast %cst_32 : f32 to vector<8x128xf32>
    %101 = arith.select %99, %97, %100 : vector<8x128xi1>, vector<8x128xf32>
    %cst_33 = arith.constant dense<0.000000e+00> : vector<8xf32>
    %102 = vector.multi_reduction <add>, %101, %cst_33 [1] : vector<8x128xf32> to vector<8xf32>
    %103 = vector.shape_cast %102 : vector<8xf32> to vector<8x1xf32>
    %cst_34 = arith.constant 3.125000e-02 : f32
    %104 = vector.broadcast %cst_34 : f32 to vector<8x1xf32>
    %105 = arith.mulf %103, %104 : vector<8x1xf32>
    %cst_35 = arith.constant 9.99999974E-6 : f32
    %106 = vector.broadcast %cst_35 : f32 to vector<8x1xf32>
    %107 = arith.addf %105, %106 : vector<8x1xf32>
    %108 = math.rsqrt %107 : vector<8x1xf32>
    %109 = vector.broadcast %108 : vector<8x1xf32> to vector<8x128xf32>
    %110 = arith.mulf %96, %109 : vector<8x128xf32>
    %c1_36 = arith.constant 1 : index
    %c128 = arith.constant 128 : index
    %111 = vector.load %arg3[%c1_36, %c128] : memref<3x256xf32, #tpu.memory_space<vmem>>, vector<1x128xf32>
    %112 = vector.broadcast %111 : vector<1x128xf32> to vector<8x128xf32>
    %113 = arith.mulf %110, %112 : vector<8x128xf32>
    %c2_37 = arith.constant 2 : index
    %c128_38 = arith.constant 128 : index
    %114 = vector.load %arg3[%c2_37, %c128_38] : memref<3x256xf32, #tpu.memory_space<vmem>>, vector<1x128xf32>
    %115 = vector.broadcast %114 : vector<1x128xf32> to vector<8x128xf32>
    %116 = arith.addf %113, %115 : vector<8x128xf32>
    %c0_39 = arith.constant 0 : index
    %c0_40 = arith.constant 0 : index
    %117 = vector.load %arg7[%c0_39, %c0_40] : memref<8x128xf32, #tpu.memory_space<vmem>>, vector<8x128xf32>
    tpu.vector_store %arg7[%c0_39, %c0_40], %116 {strides = array<i32>} : memref<8x128xf32, #tpu.memory_space<vmem>>, vector<8x128xf32>,
    %c0_41 = arith.constant 0 : index
    %c0_42 = arith.constant 0 : index
    %118 = vector.load %arg5[%c0_41, %c0_42] : memref<8x128xf32, #tpu.memory_space<vmem>>, vector<8x128xf32>
    %c0_43 = arith.constant 0 : index
    %c0_44 = arith.constant 0 : index
    %119 = vector.load %arg6[%c0_43, %c0_44] : memref<8x128xf32, #tpu.memory_space<vmem>>, vector<8x128xf32>
    %c0_45 = arith.constant 0 : index
    %c0_46 = arith.constant 0 : index
    %120 = vector.load %arg7[%c0_45, %c0_46] : memref<8x128xf32, #tpu.memory_space<vmem>>, vector<8x128xf32>
    %cst_47 = arith.constant dense<0.000000e+00> : vector<8x8xf32>
    %121 = tpu.matmul %118, %119, %cst_47 {dimension_numbers = #tpu.dot_dimension_numbers<[1], [1], [0], [0], [0, 0, 1, 0], [], []>} : vector<8x128xf32>, vector<8x128xf32>, vector<8x8xf32> -> vector<8x8xf32>
    %cst_48 = arith.constant dense<0xFF800000> : vector<8xf32>
    %122 = vector.multi_reduction <maximumf>, %121, %cst_48 [1] : vector<8x8xf32> to vector<8xf32>
    %123 = vector.shape_cast %122 : vector<8xf32> to vector<8x1xf32>
    %124 = vector.broadcast %123 : vector<8x1xf32> to vector<8x8xf32>
    %125 = arith.subf %121, %124 : vector<8x8xf32>
    %126 = math.exp %125 : vector<8x8xf32>
    %cst_49 = arith.constant dense<0.000000e+00> : vector<8xf32>
    %127 = vector.multi_reduction <add>, %126, %cst_49 [1] : vector<8x8xf32> to vector<8xf32>
    %128 = vector.shape_cast %127 : vector<8xf32> to vector<8x1xf32>
    %129 = tpu.reciprocal %128 {approx = true} : vector<8x1xf32> -> vector<8x1xf32>
    %130 = vector.broadcast %129 : vector<8x1xf32> to vector<8x8xf32>
    %131 = arith.mulf %126, %130 : vector<8x8xf32>
    %cst_50 = arith.constant dense<0.000000e+00> : vector<8x128xf32>
    %132 = tpu.matmul %131, %120, %cst_50 {dimension_numbers = #tpu.dot_dimension_numbers<[1], [0], [0], [1], [0, 0, 1, 1], [], []>} : vector<8x8xf32>, vector<8x128xf32>, vector<8x128xf32> -> vector<8x128xf32>
    %c0_51 = arith.constant 0 : index
    %c0_52 = arith.constant 0 : index
    %c0_53 = arith.constant 0 : index
    %133 = vector.load %arg4[%c0_51, %c0_52, %c0_53] : memref<1x8x128xf32, #tpu.memory_space<vmem>>, vector<1x8x128xf32>
    %134 = vector.shape_cast %133 : vector<1x8x128xf32> to vector<8x128xf32>
    %135 = vector.shape_cast %132 : vector<8x128xf32> to vector<1x8x128xf32>
    tpu.vector_store %arg4[%c0_51, %c0_52, %c0_53], %135 {strides = array<i32>} : memref<1x8x128xf32, #tpu.memory_space<vmem>>, vector<1x8x128xf32>,
    return
  }
  func.func @transform_0(%arg0: i32) -> (i32, i32) {
    %c0_i32 = arith.constant 0 : i32
    %c0_i32_0 = arith.constant 0 : i32
    return %arg0, %c0_i32 : i32, i32
  }
  func.func @transform_1(%arg0: i32) -> (i32, i32) {
    %c0_i32 = arith.constant 0 : i32
    %c0_i32_0 = arith.constant 0 : i32
    %c0_i32_1 = arith.constant 0 : i32
    return %c0_i32, %c0_i32_0 : i32, i32
  }
  func.func @transform_2(%arg0: i32) -> (i32, i32) {
    %c0_i32 = arith.constant 0 : i32
    %c0_i32_0 = arith.constant 0 : i32
    %c0_i32_1 = arith.constant 0 : i32
    return %c0_i32, %c0_i32_0 : i32, i32
  }
  func.func @transform_3(%arg0: i32) -> (i32, i32, i32) {
    %c0_i32 = arith.constant 0 : i32
    %c0_i32_0 = arith.constant 0 : i32
    %c0_i32_1 = arith.constant 0 : i32
    return %arg0, %c0_i32, %c0_i32_0 : i32, i32, i32
  }
}

</mosaic_0001>

<bundles_post_ra>
// kernel: attention_head_forward.1
= control target key start
LH: loop header
LB: loop body
LE: loop exit
PB: predicated region body
PF: predicated region fallthrough
CT: control target
= control target key end

     0   :  { %8 = vsyncpa [#allocation6], 0  ;;  %s1009_s0 = inlined_call_operand.hbm [shape: f32[16,32], index: 0, kind: input, shape index: {}]   ;;  %s1010_s1 = inlined_call_operand.hbm [shape: f32[32,256], index: 1, kind: input, shape index: {}]   ;;  %s1011_s2 = inlined_call_operand.hbm [shape: f32[3,256], index: 2, kind: input, shape index: {}]   ;;  %s1012_s3 = inlined_call_operand.hbm [shape: f32[2,8,128], index: 3, kind: output, shape index: {}]  }
   0x1   :  { %10 = vsyncpa [#allocation6 + $0x1], 0 }
   0x2   :  { %11 = vsyncpa [#allocation9], 0 }
   0x3   :  { %12 = vsyncpa [#allocation7], 0 }
   0x4   :  { %14 = vsyncpa [#allocation7 + $0x1], 0  ;;  %s832_s12 = smov 0   ;;  %s834_s13 = smov 0  }
   0x5   :  { %s836_s14 = smov 0   ;;  %s838_s15 = smov 0  }
   0x6 LB: > { %s130_s18 = sshll.u32 %s1010_s1, 4  ;;  %s856_s19 = sadd.s32 4294967295, %s805_s15   ;;  %s805_s15 = sphi %s838_s15, %s1023_s15   ;;  %s801_s14 = sphi %s836_s14, %s1022_s14   ;;  %s797_s13 = sphi %s834_s13, %s1021_s13   ;;  %s793_s12 = sphi %s832_s12, %s1020_s12   ;;  %s131_s18 = int_to_ptr.hbm [resolvable:$true] %s130_s18 }
   0x7   : > { %p542_p0 = scmp.ge.s32.totalorder %s805_s15, 1  ;;  %p41_p1 = scmp.eq.s32.totalorder %s856_s19, 0 }
   0x8   : > { %p119_p2 = scmp.lt.s32.totalorder %s805_s15, 3  ;;  %s807_s21 = smov [#allocation8]  }
   0x9   : > { %s132_s22 = sshll.u32 %s807_s21, 4  ;;  %s145_s25 = sshll.u32 %s1011_s2, 4  ;;  %s133_s22 = int_to_ptr.vmem [resolvable:$true] %s132_s22  ;;  %s146_s25 = int_to_ptr.hbm [resolvable:$true] %s145_s25 }
   0xa   : > { %p861_p3 = pnand %p542_p0, %p119_p2  ;;  %s808_s26 = smov [#allocation10]  }
   0xb   : > { %s147_s27 = sshll.u32 %s808_s26, 4  ;;  %s809_s28 = smov 256   ;;  %s148_s27 = int_to_ptr.vmem [resolvable:$true] %s147_s27 }
   0xc   : > { %p573_p4 = pneg %p861_p3  ;;  %s810_s29 = smov 16  }
   0xd   : > { %s541_s30 = sadd.s32 4294967294, %s805_s15   ;;  %s875_s4 = sadd.s32 1, %s805_s15  }
   0xe   : > { %p574_p6 = pnand %p573_p4, %p41_p1  ;;  %s24_s5 = ssub.s32 %s805_s15, %s875_s4 }
   0xf   : > { %s27_s6 = sadd.s32 1, %s801_s14  ;;  %p25_p7 = scmp.eq.s32.totalorder %s24_s5, 0 }
  0x10   : > { %576 = dma.hbm_to_vmem [thread:$0]  (!%p574_p6), %s131_s18, 1024, %s133_s22, [#allocation9], %s809_s28, %s809_s28, %s810_s29  }
  0x11   : > { %579 = dma.hbm_to_vmem [thread:$0]  (!%p574_p6), %s146_s25, 128, %s148_s27, [#allocation9]  }
  0x12   : > { %p34_p8 = scmp.ne.s32.totalorder %s801_s14, %s797_s13  ;;  %p35_p9 = scmp.eq.s32.totalorder %s805_s15, 0 }
  0x13   : > { %p40_p10 = scmp.ne.s32.totalorder %s797_s13, %s793_s12  ;;  %p106_p13 = scmp.eq.s32.totalorder %s856_s19, 1 }
  0x14   : > { %s886_s7 = scalar_select %p25_p7, %s801_s14, %s27_s6  }
  0x15   : > { %p888_p11 = por %p35_p9, %p34_p8  ;;  %p894_p12 = por %p41_p1, %p40_p10 }
  0x16   : > { %p112_p0 = scmp.eq.s32.totalorder %s541_s30, 1  ;;  %p590_p2 = scmp.lt.s32.totalorder %s805_s15, 2 }
  0x17   : > { %s158_s10 = sand.u32 1, %s801_s14   ;;  %p901_p4 = por %p106_p13, %p34_p8 }
  0x18   : > { %p905_p6 = por %p112_p0, %p40_p10  ;;  %s546_s17 = sshll.u32 %s158_s10, 3 }
  0x19   : > { %s547_s18 = sshll.u32 %s805_s15, 3  ;;  %s162_s24 = scalar_lea.vmem [#allocation5], %s546_s17 }
  0x1a   : > { %s166_s23 = scalar_lea.hbm %s1009_s0, %s547_s18  ;;  %s170_s25 = sshll.u32 %s162_s24, 4  ;;  %s171_s25 = int_to_ptr.vmem [resolvable:$true] %s170_s25 }
  0x1b   : > { %s168_s26 = sshll.u32 %s166_s23, 4  ;;  %p915_p7 = pnand %p590_p2, %p888_p11  ;;  %s169_s26 = int_to_ptr.hbm [resolvable:$true] %s168_s26 }
  0x1c   : > { %s159_s28 = scalar_lea.sflag [#allocation6], %s158_s10  ;;  %s705_s29 = sshra.s32 %s169_s26, 4  ;;  %s706_s29 = int_to_ptr.hbm [resolvable:$true] %s705_s29 }
  0x1d   : > { %s707_s30 = scalar_lea.hbm %s706_s29, 8  ;;  %p709_p9 = pneg %p915_p7 }
  0x1e   : > { %p708_p8 = scmp.ne.s32.totalorder %s706_s29, %s707_s30  ;;  %s712_s17 = scalar_lea.hbm %s1009_s0, 16 }
  0x1f   : > { %p713_p11 = scmp.lt.s32.totalorder %s706_s29, %s1009_s0  ;;  %p714_p0 = scmp.lt.s32.totalorder %s712_s17, %s707_s30 }
  0x20   : > { %p710_p10 = pnand %p709_p9, %p708_p8 }
  0x21   : > { %p715_p2 = por %p714_p0, %p713_p11 }
  0x22   : > { %p711_p13 = pneg %p710_p10 }
  0x24   : > { %p716_p5 = pnand %p715_p2, %p711_p13 }
  0x26   : > { %719 = shalt.err (!%p716_p5)
}
  0x27   : > { %583 = dma.hbm_to_vmem [thread:$0]  (!%p915_p7), %s169_s26, 128, %s171_s25, %s159_s28  }
  0x28   : > { %179 = sbr.rel (%p861_p3) target bundleno = 1077 (0x435), region = 32  ;;  %s932_s10 = sand.u32 (!%p861_p3), 1, %s797_s13  }
  0x29   : > { %s549_s21 = sshll.u32 (!%p861_p3), %s932_s10, 3  ;;  %s182_s22 = scalar_lea.sflag (!%p861_p3), [#allocation6], %s932_s10 }
  0x2a   : > { %s185_s23 = scalar_lea.vmem (!%p861_p3), [#allocation5], %s549_s21 }
  0x2d   : > { %780 = dma.done.wait (%p894_p12), %s182_s22, 128  }
  0x2e   : > { %782 = vsyncadd (%p894_p12), %s182_s22, 4294967168 }
  0x2f   : > { %784 = dma.done.wait (%p41_p1), [#allocation9], 1152  }
  0x30   : > { %786 = vsyncadd (%p41_p1), [#allocation9], 4294966144  ;;  %v226_v0 = vld [vmem:[#allocation8 + $0x30] sm:$0xff]  ;;  %v224_v1 = vld [vmem:[#allocation8 + $0x20] sm:$0xff]  ;;  %vm234_vm0 = vcmask 261120   ;;  %v278_v5 = vlaneseq  ;;  %s811_s20 = smov 64  }
  0x31   : > { %250 = vmatpush.msra.mxu0 %v226_v0  ;;  %v222_v2 = vld [vmem:[#allocation8 + $0x10] sm:$0xff]  ;;  %v220_v3 = vld [vmem:[#allocation8] sm:$0xff]  ;;  %v227_v13 = vld [vmem:[#allocation8 + $0x38] sm:$0xff]  ;;  %vm400_vm10 = vcmask 64512   ;;  %s557_s9 = sshll.u32 %s856_s19, 3  ;;  %s218_s27 = scalar_lea.vmem [#allocation11], %s549_s21 }
  0x32   : > { %v219_v4 = vld [vmem:[%s185_s23] sm:$0xff]  ;;  %v947_v6 = vld [vmem:[#allocation10] ss:$4 sm:$0x3]  ;;  %v949_v7 = vand.u32 127, %v278_v5  ;;  %v225_v14 = vld [vmem:[#allocation8 + $0x28] sm:$0xff]  ;;  %270 = vmatpush.msra.mxu1 %v227_v13  ;;  %s447_s26 = scalar_lea.hbm %s1012_s3, %s557_s9 }
  0x33   : > { %251 = vmatpush.msra.mxu0 %v224_v1  ;;  %v230_v8 = vperm.slane %v947_v6, 0  ;;  %v223_v15 = vld [vmem:[#allocation8 + $0x18] sm:$0xff]  ;;  %v221_v16 = vld [vmem:[#allocation8 + $0x8] sm:$0xff]  ;;  %v631_v47 = vld [vmem:[#allocation10 + $0x1] ss:$0 sm:$0xff]  ;;  %v231_v55 = vperm.slane %v947_v6, 1 }
  0x34   : > { %vm280_vm1 = vcmp.lt.s32.totalorder %v949_v7, 64  ;;  %vm281_vm2 = vcmp.ge.s32.totalorder %v949_v7, 64  ;;  %271 = vmatpush.msra.mxu1 %v225_v14  ;;  %v632_v50 = vld [vmem:[#allocation10 + $0x2] ss:$0 sm:$0xff]  ;;  %vm345_vm9 = vcmp.lt.s32.totalorder %v949_v7, 32  ;;  %s449_s28 = sshll.u32 %s218_s27, 4  ;;  %s450_s28 = int_to_ptr.vmem [resolvable:$true] %s449_s28 }
  0x35   : > { %252 = vmatpush.msra.mxu0 %v222_v2  ;;  %s451_s29 = sshll.u32 %s447_s26, 4  ;;  %s437_s30 = scalar_lea.sflag [#allocation7], %s932_s10  ;;  %s452_s29 = int_to_ptr.hbm [resolvable:$true] %s451_s29 }
  0x36   : > { %272 = vmatpush.msra.mxu1 %v223_v15  ;;  %v634_v15 = vld [vmem:[#allocation10 + $0x6] ss:$0 sm:$0xff]  ;;  %s749_s5 = sshra.s32 %s452_s29, 4  ;;  %s755_s18 = scalar_lea.hbm %s1012_s3, 16  ;;  %s750_s5 = int_to_ptr.hbm [resolvable:$true] %s749_s5 }
  0x37   : > { %253 = vmatpush.msra.mxu0 %v220_v3  ;;  %s751_s6 = scalar_lea.hbm %s750_s5, 8  ;;  %p756_p12 = scmp.lt.s32.totalorder %s750_s5, %s1012_s3 }
  0x38   : > { %553 = vmatmul.msk.f32.vlgmr.msra.gmra.mxu0 %vm234_vm0, %v219_v4  ;;  %273 = vmatpush.msra.mxu1 %v221_v16  ;;  %p752_p1 = scmp.ne.s32.totalorder %s750_s5, %s751_s6  ;;  %p757_p7 = scmp.lt.s32.totalorder %s755_s18, %s751_s6 }
  0x39   : > { %554 = vmatmul.msk.f32.vlgmr.msra.gmra.mxu1 %vm234_vm0, %v219_v4 }
  0x3a   : > { %p753_p3 = pnand %p752_p1, %p901_p4  ;;  %p758_p8 = por %p757_p7, %p756_p12 }
  0x3c   : > { %p754_p5 = pneg %p753_p3 }
  0x3e   : > { %p759_p9 = pnand %p758_p8, %p754_p5 }
  0xb5   : > { %v255_v9 = vpop.f32.mrf.mxu0 }
  0xb6   : > { %v256_v10 = vadd.f32 %v255_v9, %v230_v8  ;;  %v275_v56 = vpop.f32.mrf.mxu1 }
  0xb7   : > { %v276_v57 = vadd.f32 %v275_v56, %v231_v55 }
  0xb8   : > { %v286_v11 = vsel %vm280_vm1, %v256_v10, 0.0  ;;  %v309_v12 = vsel %vm281_vm2, %v256_v10, 0.0 }
  0xb9   : > { %287 = vadd.xlane.f32.xlu0 %v286_v11  ;;  %v348_v58 = vsel %vm345_vm9, %v276_v57, 0.0 }
  0xc1   : > { %310 = vadd.xlane.f32.xlu0 %v309_v12  ;;  %v633_v12 = vld [vmem:[#allocation10 + $0x5] ss:$0 sm:$0xff] }
 0x12c   : > { %v288_v17 = vpop.xlane.xlu0 %287 }
 0x12d   : > { %v289_v18 = vmul.f32 0.015625, %v288_v17 }
 0x12f   : > { %v290_v19 = vsub.f32 %v256_v10, %v289_v18 }
 0x131   : > { %v291_v20 = vmul.f32 %v290_v19, %v290_v19 }
 0x133   : > { %v292_v21 = vsel %vm280_vm1, %v291_v20, 0.0 }
 0x134   : > { %293 = vadd.xlane.f32.xlu1 %v292_v21  ;;  %v311_v22 = vpop.xlane.xlu0 %310 }
 0x135   : > { %v312_v23 = vmul.f32 0.015625, %v311_v22 }
 0x137   : > { %v313_v24 = vsub.f32 %v256_v10, %v312_v23 }
 0x139   : > { %v314_v25 = vmul.f32 %v313_v24, %v313_v24 }
 0x13b   : > { %v315_v26 = vsel %vm281_vm2, %v314_v25, 0.0 }
 0x13c   : > { %316 = vadd.xlane.f32.xlu1 %v315_v26 }
 0x1a7   : > { %v294_v27 = vpop.xlane.xlu1 %293 }
 0x1a8   : > { %v295_v28 = vmul.f32 0.015625, %v294_v27 }
 0x1aa   : > { %v296_v29 = vadd.f32 1e-05, %v295_v28 }
 0x1ac   : > { %635 = vrsqrt.f32 %v296_v29  ;;  %vm303_vm4 = vweird.f32 %v296_v29 }
 0x1af   : > { %v317_v30 = vpop.xlane.xlu1 %316 }
 0x1b0   : > { %v318_v31 = vmul.f32 0.015625, %v317_v30 }
 0x1b2   : > { %v636_v32 = vpop.eup %635  ;;  %v319_v33 = vadd.f32 1e-05, %v318_v31 }
 0x1b3   : > { %v298_v34 = vmul.f32 %v636_v32, %v296_v29  ;;  %vm304_vm3 = vweird.f32 %v636_v32 }
 0x1b4   : > { %637 = vrsqrt.f32 %v319_v33  ;;  %vm305_vm6 = vmor %vm303_vm4, %vm304_vm3  ;;  %vm326_vm7 = vweird.f32 %v319_v33 }
 0x1b5   : > { %v299_v35 = vmul.f32 %v636_v32, %v298_v34 }
 0x1b7   : > { %v300_v36 = vmul.f32 0.5, %v299_v35 }
 0x1b9   : > { %v301_v38 = vsub.f32 1.5, %v300_v36 }
 0x1ba   : > { %v638_v37 = vpop.eup %637 }
 0x1bb   : > { %v321_v39 = vmul.f32 %v638_v37, %v319_v33  ;;  %v302_v41 = vmul.f32 %v636_v32, %v301_v38  ;;  %vm327_vm5 = vweird.f32 %v638_v37 }
 0x1bc   : > { %vm328_vm8 = vmor %vm326_vm7, %vm327_vm5 }
 0x1bd   : > { %v322_v40 = vmul.f32 %v638_v37, %v321_v39  ;;  %v306_v44 = vsel %vm305_vm6, %v636_v32, %v302_v41 }
 0x1be   : > { %v330_v48 = vmul.f32 %v306_v44, %v290_v19 }
 0x1bf   : > { %v323_v42 = vmul.f32 0.5, %v322_v40 }
 0x1c1   : > { %v324_v43 = vsub.f32 1.5, %v323_v42 }
 0x1c3   : > { %v325_v45 = vmul.f32 %v638_v37, %v324_v43 }
 0x1c5   : > { %v329_v46 = vsel %vm328_vm8, %v638_v37, %v325_v45 }
 0x1c6   : > { %v331_v49 = vmul.f32 %v329_v46, %v313_v24 }
 0x1c8   : > { %v332_v51 = vsel %vm280_vm1, %v330_v48, %v331_v49 }
 0x1c9   : > { %v335_v52 = vmul.f32 %v631_v47, %v332_v51 }
 0x1cb   : > { %v338_v53 = vadd.f32 %v632_v50, %v335_v52 }
 0x1cd   : > { %v341_v54 = vsel %vm281_vm2, %v338_v53, 0.0 }
 0x1ce   : > { %342 = vrot.lane.b32.xlu2 %v341_v54, %s811_s20 }
 0x1f7   : > { %349 = vadd.xlane.f32.xlu2 %v348_v58 }
 0x228   : > { %v343_v59 = vpop.permute.xlu2 %342 }
 0x229   : > { %395 = vmatpush.xpose.msra.mxu2 %v343_v59 }
 0x22c   : > { %560 = vmatmul.msk.f32.vlgmr.msra.gmra.mxu2 %vm280_vm1, %v338_v53 }
 0x26a   : > { %v350_v60 = vpop.xlane.xlu2 %349 }
 0x26b   : > { %v351_v61 = vmul.f32 0.03125, %v350_v60 }
 0x26d   : > { %v352_v62 = vsub.f32 %v276_v57, %v351_v61 }
 0x26f   : > { %v353_v63 = vmul.f32 %v352_v62, %v352_v62 }
 0x271   : > { %v354_v0 = vsel %vm345_vm9, %v353_v63, 0.0 }
 0x272   : > { %355 = vadd.xlane.f32.xlu1 %v354_v0 }
 0x2af   : > { %v397_v1 = vpop.f32.mrf.mxu2 }
 0x2b0   : > { %v401_v2 = vsel %vm400_vm10, %v397_v1, -inf }
 0x2b1   : > { %402 = vmax.xlane.f32.xlu0 %v401_v2 }
 0x2e5   : > { %v356_v3 = vpop.xlane.xlu1 %355 }
 0x2e6   : > { %v357_v4 = vmul.f32 0.03125, %v356_v3 }
 0x2e8   : > { %v358_v5 = vadd.f32 1e-05, %v357_v4 }
 0x2ea   : > { %639 = vrsqrt.f32 %v358_v5  ;;  %vm365_vm11 = vweird.f32 %v358_v5 }
 0x2f0   : > { %v640_v6 = vpop.eup %639 }
 0x2f1   : > { %v360_v8 = vmul.f32 %v640_v6, %v358_v5  ;;  %vm366_vm12 = vweird.f32 %v640_v6 }
 0x2f2   : > { %vm367_vm13 = vmor %vm365_vm11, %vm366_vm12 }
 0x2f3   : > { %v361_v9 = vmul.f32 %v640_v6, %v360_v8 }
 0x2f5   : > { %v362_v7 = vmul.f32 0.5, %v361_v9 }
 0x2f7   : > { %v363_v10 = vsub.f32 1.5, %v362_v7 }
 0x2f9   : > { %v364_v11 = vmul.f32 %v640_v6, %v363_v10 }
 0x2fb   : > { %v368_v13 = vsel %vm367_vm13, %v640_v6, %v364_v11 }
 0x2fc   : > { %v369_v14 = vmul.f32 %v368_v13, %v352_v62 }
 0x2fe   : > { %v372_v16 = vmul.f32 %v633_v12, %v369_v14 }
 0x300   : > { %v375_v17 = vadd.f32 %v634_v15, %v372_v16 }
 0x302   : > { %430 = vmatpush.msra.mxu3 %v375_v17 }
 0x324   : > { %v403_v18 = vpop.xlane.xlu0 %402 }
 0x325   : > { %v404_v19 = vsub.f32 %v397_v1, %v403_v18 }
 0x327   : > { %v405_v20 = vmul.f32 1.442695, %v404_v19 }
 0x329   : > { %641 = vpow2.f32 %v405_v20 }
 0x32f   : > { %v642_v21 = vpop.eup %641 }
 0x330   : > { %v407_v22 = vsel %vm400_vm10, %v642_v21, 0.0 }
 0x331   : > { %408 = vadd.xlane.f32.xlu0 %v407_v22 }
 0x3a4   : > { %v409_v23 = vpop.xlane.xlu0 %408 }
 0x3a5   : > { %643 = vrcp.f32 %v409_v23 }
 0x3ab   : > { %v644_v24 = vpop.eup %643 }
 0x3ac   : > { %v411_v25 = vmul.f32 %v644_v24, %v642_v21 }
 0x3ae   : > { %555 = vmatmul.msk.f32.vlgmr.msra.gmra.mxu3 %vm400_vm10, %v411_v25 }
 0x431   : > { %v432_v26 = vpop.f32.mrf.mxu3 }
 0x432   : > { %435 = vst [vmem:[%s218_s27] sm:$0xff] %v432_v26 }
 0x433   : > { %762 = shalt.err (!%p759_p9)
}
 0x434   : > { %571 = dma.vmem_to_hbm [thread:$0]  (%p901_p4), %s450_s28, 128, %s452_s29, %s437_s30  }
 0x435 PF: > { %s463_s10 = sand.u32 1, %s793_s12   ;;  %p1019_p10 = scmp.ge.s32.totalorder %s805_s15, 2 }
 0x436   : > { %s464_s22 = scalar_lea.sflag [#allocation7], %s463_s10 }
 0x437   : > { %p585_p13 = pnand %p1019_p10, %p905_p6 }
 0x439   : > { %p586_p11 = pneg %p585_p13 }
 0x43b   : > { %788 = dma.done.wait (%p586_p11), %s464_s22, 128  }
 0x43c   : > { %790 = vsyncadd (%p586_p11), %s464_s22, 4294967168  ;;  %p17_p0 = scmp.ge.s32.totalorder %s875_s4, 4   ;;  %s1020_s12 = smov %s797_s13 }
 0x43d   : > { %s1021_s13 = smov %s801_s14  ;;  %s1022_s14 = smov %s886_s7 }
 0x43e   : > { %s1023_s15 = smov %s875_s4  ;;  %19 = sbr.rel (!%p17_p0) target bundleno = 6 (0x6), region = 85 }
 0x443   :  { %470 = vsyncpa [#allocation6], 1 }
 0x444   :  { %472 = vsyncpa [#allocation6 + $0x1], 1 }
 0x445   :  { %473 = vsyncpa [#allocation9], 1 }
 0x446   :  { %474 = vsyncpa [#allocation7], 1 }
 0x447   :  { %476 = vsyncpa [#allocation7 + $0x1], 1 }

</bundles_post_ra>
